<compile_context>
chip_gen: v7x
topology: tpu7x:2x2x1
jax: 0.10.0
libtpu: 0.0.40
codegen_flags: <defaults>
</compile_context>

<pallas_src>
import functools

import jax
import jax.numpy as jnp
from jax import lax
from jax.experimental import pallas as pl
from jax.experimental.pallas import tpu as pltpu
import numpy as np


def _largest_tile(n, target):
    """Largest t <= target with n % t == 0 and t a multiple of 128, else n."""
    if n <= target:
        return n
    t = (target // 128) * 128
    while t >= 128:
        if n % t == 0:
            return t
        t -= 128
    # TODO(synk): ragged N (not a multiple of 128) falls back to one full-width
    # tile; add masked boundary tiles if such shapes become relevant.
    return n


def proj_kernel(x_ref, w_ref, b_ref, q_ref, k_ref, v_ref):
    """Fused 1x1 convs: one stacked matmul, rows = [Q(pad) | K(pad) | V]."""
    kd_p = q_ref.shape[1]
    # Cast the activation tile to the matmul dtype (bf16 by default) so the
    # projection actually runs at bf16 MXU rate; accumulate in f32, add f32 bias.
    x = x_ref[0].astype(w_ref.dtype)                                # (C, TN)
    y = jnp.dot(w_ref[...], x,
                preferred_element_type=jnp.float32) + b_ref[...]   # (R, TN) f32
    q_ref[0] = y[:kd_p].astype(q_ref.dtype)
    k_ref[0] = y[kd_p:2 * kd_p].astype(k_ref.dtype)
    v_ref[0] = y[2 * kd_p:].astype(v_ref.dtype)


def pam_attn_kernel(q_ref, k_ref, v_ref, x_ref, gamma_ref, o_ref,
                    m_sc, l_sc, acc_sc):
    ki = pl.program_id(2)

    @pl.when(ki == 0)
    def _init():
        m_sc[...] = jnp.full(m_sc.shape, -jnp.inf, m_sc.dtype)
        l_sc[...] = jnp.zeros(l_sc.shape, l_sc.dtype)
        acc_sc[...] = jnp.zeros(acc_sc.shape, acc_sc.dtype)

    q = q_ref[0]            # (Kd_p, TQ)  mm_dtype
    k = k_ref[0]            # (Kd_p, TK)  mm_dtype
    v = v_ref[0]            # (C,    TK)  mm_dtype

    # s[j, i] = sum_c K[c, j] * Q[c, i]  -> (TK, TQ), f32 accumulation.
    # Only the small (Kd_p, TK) operand uses a transposed contraction; the
    # NxN-scale tile is never transposed.
    s = lax.dot_general(k, q, (((0,), (0,)), ((), ())),
                        preferred_element_type=jnp.float32)

    # Online softmax over the KV axis; stats are lane-dense (1, TQ), f32.
    m_prev = m_sc[...]
    m_new = jnp.maximum(m_prev, jnp.max(s, axis=0, keepdims=True))
    alpha = jnp.exp(m_prev - m_new)                       # (1, TQ)
    p = jnp.exp(s - m_new)                                # (TK, TQ), unnormalized

    l_sc[...] = alpha * l_sc[...] + jnp.sum(p, axis=0, keepdims=True)
    # Unnormalized PV accumulate: canonical MXU matmul (bf16 operands by
    # default), f32 accumulation.
    acc_sc[...] = alpha * acc_sc[...] + jnp.dot(
        v, p.astype(v.dtype), preferred_element_type=jnp.float32)
    m_sc[...] = m_new

    @pl.when(ki == pl.num_programs(2) - 1)
    def _finalize():
        # Normalize AFTER the PV matmul (C*TQ multiplies instead of N^2).
        inv_l = pl.reciprocal(l_sc[...], approx=True)     # EUP vrcp
        inv_l = inv_l * (2.0 - l_sc[...] * inv_l)         # one Newton step
        out = gamma_ref[0] * (acc_sc[...] * inv_l) + x_ref[0]
        o_ref[0] = out.astype(o_ref.dtype)


def pam_module(x_nchw, wq, bq, wk, bk, wv, bv, gamma, *,
               tq=None, tk=None, tn=None, matmul_dtype=None, kv_buffers=None):
    """x_nchw: (B, C, H, W). Returns (B, C, H, W). Matches PAM_Module.forward.

    matmul_dtype: MXU operand dtype. Default: bf16 when the input is f32
      (f32 accumulation everywhere), otherwise the input dtype. Pass
      jnp.float32 for the exact path.
    kv_buffers: optional pipeline depth for the K/V streams (e.g. 3 on v7x).
    """
    B, C, H, W = x_nchw.shape
    N = H * W
    Kd = wq.shape[0]
    Cout = wv.shape[0]
    assert Cout == C, "residual add requires out_dim == in_dim"

    in_dtype = x_nchw.dtype
    if matmul_dtype is None:
        mm_dtype = jnp.bfloat16 if in_dtype == jnp.float32 else in_dtype
    else:
        mm_dtype = matmul_dtype
    mm_bytes = jnp.dtype(mm_dtype).itemsize

    # Pad key dim to the packed sublane multiple (16 for 2-byte dtypes, else 8)
    # so Q/K slices and blocks stay tile-aligned with no masked stores.
    sub = 16 if mm_bytes == 2 else 8
    kd_p = ((Kd + sub - 1) // sub) * sub
    R = 2 * kd_p + C

    # Stacked 1x1-conv weight/bias; padded Q/K rows are zero => contribute 0
    # to the energy, so no un-padding is needed downstream.
    w_all = jnp.zeros((R, C), jnp.float32)
    w_all = w_all.at[:Kd].set(wq.astype(jnp.float32))
    w_all = w_all.at[kd_p:kd_p + Kd].set(wk.astype(jnp.float32))
    w_all = w_all.at[2 * kd_p:].set(wv.astype(jnp.float32))
    w_all = w_all.astype(mm_dtype)                      # bf16 MXU operand
    b_all = jnp.zeros((R, 1), jnp.float32)              # bias stays f32
    b_all = b_all.at[:Kd, 0].set(bq.astype(jnp.float32))
    b_all = b_all.at[kd_p:kd_p + Kd, 0].set(bk.astype(jnp.float32))
    b_all = b_all.at[2 * kd_p:, 0].set(bv.astype(jnp.float32))

    x_flat = x_nchw.reshape(B, C, N)
    gamma_s = gamma.reshape(1).astype(jnp.float32)

    # Production defaults: TQ=1024 (moves attention to MXU-bound), TK=512
    # (fewer ki steps -> less accumulator rescale / per-step overhead),
    # TN=1024 for the HBM-bound projection. All multiples of 256 when N allows.
    TN = tn if tn is not None else _largest_tile(N, 1024)
    TQ = tq if tq is not None else _largest_tile(N, 1024)
    TK = tk if tk is not None else _largest_tile(N, 512)
    assert N % TN == 0 and N % TQ == 0 and N % TK == 0

    VMEM_LIMIT = 48 * 1024 * 1024   # safe on v5e/v6e (128 MiB) and v7x (64 MiB)

    # ---- fused Q/K/V projection ------------------------------------------
    q, k, v = pl.pallas_call(
        proj_kernel,
        out_shape=(jax.ShapeDtypeStruct((B, kd_p, N), mm_dtype),
                   jax.ShapeDtypeStruct((B, kd_p, N), mm_dtype),
                   jax.ShapeDtypeStruct((B, C, N), mm_dtype)),
        grid_spec=pltpu.PrefetchScalarGridSpec(
            num_scalar_prefetch=0,
            grid=(B, N // TN),
            in_specs=[
                pl.BlockSpec((1, C, TN), lambda b, n: (b, 0, n)),   # x
                pl.BlockSpec((R, C), lambda b, n: (0, 0)),          # stacked W
                pl.BlockSpec((R, 1), lambda b, n: (0, 0)),          # stacked bias
            ],
            out_specs=(
                pl.BlockSpec((1, kd_p, TN), lambda b, n: (b, 0, n)),
                pl.BlockSpec((1, kd_p, TN), lambda b, n: (b, 0, n)),
                pl.BlockSpec((1, C, TN), lambda b, n: (b, 0, n)),
            )),
        compiler_params=pltpu.CompilerParams(
            dimension_semantics=("parallel", "parallel"),
            vmem_limit_bytes=VMEM_LIMIT),
        cost_estimate=pl.CostEstimate(
            flops=2 * B * R * C * N,
            transcendentals=0,
            bytes_accessed=(4 * B * N * C            # x in (f32)
                            + mm_bytes * (B * N * R + R * C))),
    )(x_flat, w_all, b_all)

    # ---- flash-style position attention + residual ------------------------
    def kv_spec(shape, index_map):
        if kv_buffers is None:
            return pl.BlockSpec(shape, index_map)
        return pl.BlockSpec(shape, index_map, pipeline_mode=pl.Buffered(kv_buffers))

    # NOTE(v7x megacore): keep B * (N // TQ) even so both TCs get equal tiles.
    out_flat = pl.pallas_call(
        pam_attn_kernel,
        out_shape=jax.ShapeDtypeStruct((B, C, N), in_dtype),
        grid_spec=pltpu.PrefetchScalarGridSpec(
            num_scalar_prefetch=0,
            grid=(B, N // TQ, N // TK),
            in_specs=[
                pl.BlockSpec((1, kd_p, TQ), lambda b, qi, ki: (b, 0, qi)),  # Q
                kv_spec((1, kd_p, TK), lambda b, qi, ki: (b, 0, ki)),       # K
                kv_spec((1, C, TK), lambda b, qi, ki: (b, 0, ki)),          # V
                pl.BlockSpec((1, C, TQ), lambda b, qi, ki: (b, 0, qi)),     # x (residual)
                pl.BlockSpec(memory_space=pltpu.MemorySpace.SMEM),          # gamma scalar
            ],
            out_specs=pl.BlockSpec((1, C, TQ), lambda b, qi, ki: (b, 0, qi)),
            scratch_shapes=[
                pltpu.VMEM((1, TQ), jnp.float32),     # running max
                pltpu.VMEM((1, TQ), jnp.float32),     # running denom
                pltpu.VMEM((C, TQ), jnp.float32),     # unnormalized output acc
            ]),
        compiler_params=pltpu.CompilerParams(
            dimension_semantics=("parallel", "parallel", "arbitrary"),
            vmem_limit_bytes=VMEM_LIMIT),
        cost_estimate=pl.CostEstimate(
            flops=2 * B * N * N * (kd_p + C),
            transcendentals=B * N * N,
            bytes_accessed=(mm_bytes * B * (N * kd_p                   # Q
                                            + (N // TQ) * N * (kd_p + C))  # K/V restream
                            + 4 * B * N * C * 2)),                     # x + out (f32)
    )(q, k, v, x_flat, gamma_s)

    return out_flat.reshape(B, C, H, W)


def pam_reference(x_nchw, wq, bq, wk, bk, wv, bv, gamma):
    """Pure-JAX reference mirroring the PyTorch forward."""
    B, C, H, W = x_nchw.shape
    N = H * W
    xf = x_nchw.reshape(B, C, N)
    q = jnp.einsum('oc,bcn->bon', wq, xf) + bq[None, :, None]
    k = jnp.einsum('oc,bcn->bon', wk, xf) + bk[None, :, None]
    v = jnp.einsum('oc,bcn->bon', wv, xf) + bv[None, :, None]
    energy = jnp.einsum('bkn,bkm->bnm', q, k)
    attn = jax.nn.softmax(energy, axis=-1)
    out = jnp.einsum('bcm,bnm->bcn', v, attn)
    out = gamma.reshape(()) * out + xf
    return out.reshape(B, C, H, W)


if __name__ == "__main__":
    # Small shapes consistent with the module: B=2, in_dim=4, key_dim=2,
    # out_dim=4 (must equal in_dim for the residual/view), H=W=16 -> N=256.
    B, C, Kd, H, W = 2, 4, 2, 16, 16

    key = jax.random.PRNGKey(0)
    kx, kwq, kbq, kwk, kbk, kwv, kbv = jax.random.split(key, 7)

    x = jax.random.normal(kx, (B, C, H, W), dtype=jnp.float32)
    # Conv2d(kernel_size=1) weights: (out_ch, in_ch); biases: (out_ch,)
    wq = jax.random.normal(kwq, (Kd, C), dtype=jnp.float32) * 0.2
    bq = jax.random.normal(kbq, (Kd,), dtype=jnp.float32) * 0.1
    wk = jax.random.normal(kwk, (Kd, C), dtype=jnp.float32) * 0.2
    bk = jax.random.normal(kbk, (Kd,), dtype=jnp.float32) * 0.1
    wv = jax.random.normal(kwv, (C, C), dtype=jnp.float32) * 0.2
    bv = jax.random.normal(kbv, (C,), dtype=jnp.float32) * 0.1
    # Module inits gamma to 0 (identity); use a nonzero value so the attention
    # path is actually exercised/verified.
    gamma = jnp.array([0.5], dtype=jnp.float32)

    ref = pam_reference(x, wq, bq, wk, bk, wv, bv, gamma)

    # Tiles of 128 so the online-softmax KV loop and query tiling are exercised
    # (grid = (2, 2, 2)). Production shapes use the larger defaults.
    # 1) Exact f32 MXU path: tight tolerance.
    out_f32 = pam_module(x, wq, bq, wk, bk, wv, bv, gamma,
                         tq=128, tk=128, tn=128, matmul_dtype=jnp.float32)
    out_f32 = jax.block_until_ready(out_f32)
    np.testing.assert_allclose(np.asarray(out_f32), np.asarray(ref),
                               rtol=2e-5, atol=2e-5)

    # 2) Default bf16 MXU path (f32 accumulation): relaxed tolerance.
    out_bf16 = pam_module(x, wq, bq, wk, bk, wv, bv, gamma,
                          tq=128, tk=128, tn=128)
    out_bf16 = jax.block_until_ready(out_bf16)
    np.testing.assert_allclose(np.asarray(out_bf16), np.asarray(ref),
                               rtol=3e-2, atol=3e-2)

    print("KERNEL_OK")
</pallas_src>

<mosaic_0001>
module attributes {stable_mosaic.version = 11 : i64} {
  func.func @proj_kernel(%arg0: i32, %arg1: i32, %arg2: memref<1x4x128xf32, #tpu.memory_space<vmem>>, %arg3: memref<20x4xf32, #tpu.memory_space<vmem>>, %arg4: memref<20x1xf32, #tpu.memory_space<vmem>>, %arg5: memref<1x8x128xf32, #tpu.memory_space<vmem>>, %arg6: memref<1x8x128xf32, #tpu.memory_space<vmem>>, %arg7: memref<1x4x128xf32, #tpu.memory_space<vmem>>) attributes {dimension_semantics = [#tpu.dimension_semantics<parallel>, #tpu.dimension_semantics<parallel>], iteration_bounds = array<i64: 2, 2>, scalar_prefetch = 0 : i64, scratch_operands = 0 : i64, tpu.core_type = #tpu.core_type<tc>, window_params = [{transform_indices = @transform_0, window_bounds = array<i64: 1, 4, 128>}, {pipeline_mode = #tpu.pipeline_mode<synchronous>, transform_indices = @transform_1, window_bounds = array<i64: 20, 4>}, {pipeline_mode = #tpu.pipeline_mode<synchronous>, transform_indices = @transform_2, window_bounds = array<i64: 20, 1>}, {transform_indices = @transform_3, window_bounds = array<i64: 1, 8, 128>}, {transform_indices = @transform_4, window_bounds = array<i64: 1, 8, 128>}, {transform_indices = @transform_5, window_bounds = array<i64: 1, 4, 128>}]} {
    %c0 = arith.constant 0 : index
    %c0_0 = arith.constant 0 : index
    %c0_1 = arith.constant 0 : index
    %0 = vector.load %arg2[%c0, %c0_0, %c0_1] : memref<1x4x128xf32, #tpu.memory_space<vmem>>, vector<1x4x128xf32>
    %1 = vector.shape_cast %0 : vector<1x4x128xf32> to vector<4x128xf32>
    %c0_2 = arith.constant 0 : index
    %c0_3 = arith.constant 0 : index
    %2 = vector.load %arg3[%c0_2, %c0_3] : memref<20x4xf32, #tpu.memory_space<vmem>>, vector<20x4xf32>
    %cst = arith.constant dense<0.000000e+00> : vector<20x128xf32>
    %3 = tpu.matmul %2, %1, %cst {dimension_numbers = #tpu.dot_dimension_numbers<[1], [0], [0], [1], [0, 0, 1, 1], [], []>} : vector<20x4xf32>, vector<4x128xf32>, vector<20x128xf32> -> vector<20x128xf32>
    %c0_4 = arith.constant 0 : index
    %c0_5 = arith.constant 0 : index
    %4 = vector.load %arg4[%c0_4, %c0_5] : memref<20x1xf32, #tpu.memory_space<vmem>>, vector<20x1xf32>
    %5 = vector.broadcast %4 : vector<20x1xf32> to vector<20x128xf32>
    %6 = arith.addf %3, %5 : vector<20x128xf32>
    %7 = vector.extract_strided_slice %6 {offsets = [0, 0], sizes = [8, 128], strides = [1, 1]} : vector<20x128xf32> to vector<8x128xf32>
    %c0_6 = arith.constant 0 : index
    %c0_7 = arith.constant 0 : index
    %c0_8 = arith.constant 0 : index
    %8 = vector.load %arg5[%c0_6, %c0_7, %c0_8] : memref<1x8x128xf32, #tpu.memory_space<vmem>>, vector<1x8x128xf32>
    %9 = vector.shape_cast %8 : vector<1x8x128xf32> to vector<8x128xf32>
    %10 = vector.shape_cast %7 : vector<8x128xf32> to vector<1x8x128xf32>
    tpu.vector_store %arg5[%c0_6, %c0_7, %c0_8], %10 {strides = array<i32>} : memref<1x8x128xf32, #tpu.memory_space<vmem>>, vector<1x8x128xf32>,
    %11 = vector.extract_strided_slice %6 {offsets = [8, 0], sizes = [8, 128], strides = [1, 1]} : vector<20x128xf32> to vector<8x128xf32>
    %c0_9 = arith.constant 0 : index
    %c0_10 = arith.constant 0 : index
    %c0_11 = arith.constant 0 : index
    %12 = vector.load %arg6[%c0_9, %c0_10, %c0_11] : memref<1x8x128xf32, #tpu.memory_space<vmem>>, vector<1x8x128xf32>
    %13 = vector.shape_cast %12 : vector<1x8x128xf32> to vector<8x128xf32>
    %14 = vector.shape_cast %11 : vector<8x128xf32> to vector<1x8x128xf32>
    tpu.vector_store %arg6[%c0_9, %c0_10, %c0_11], %14 {strides = array<i32>} : memref<1x8x128xf32, #tpu.memory_space<vmem>>, vector<1x8x128xf32>,
    %15 = vector.extract_strided_slice %6 {offsets = [16, 0], sizes = [4, 128], strides = [1, 1]} : vector<20x128xf32> to vector<4x128xf32>
    %c0_12 = arith.constant 0 : index
    %c0_13 = arith.constant 0 : index
    %c0_14 = arith.constant 0 : index
    %16 = vector.load %arg7[%c0_12, %c0_13, %c0_14] : memref<1x4x128xf32, #tpu.memory_space<vmem>>, vector<1x4x128xf32>
    %17 = vector.shape_cast %16 : vector<1x4x128xf32> to vector<4x128xf32>
    %18 = vector.shape_cast %15 : vector<4x128xf32> to vector<1x4x128xf32>
    tpu.vector_store %arg7[%c0_12, %c0_13, %c0_14], %18 {strides = array<i32>} : memref<1x4x128xf32, #tpu.memory_space<vmem>>, vector<1x4x128xf32>,
    return
  }
  func.func @transform_0(%arg0: i32, %arg1: i32) -> (i32, i32, i32) {
    %c0_i32 = arith.constant 0 : i32
    %c0_i32_0 = arith.constant 0 : i32
    return %arg0, %c0_i32, %arg1 : i32, i32, i32
  }
  func.func @transform_1(%arg0: i32, %arg1: i32) -> (i32, i32) {
    %c0_i32 = arith.constant 0 : i32
    %c0_i32_0 = arith.constant 0 : i32
    %c0_i32_1 = arith.constant 0 : i32
    return %c0_i32, %c0_i32_0 : i32, i32
  }
  func.func @transform_2(%arg0: i32, %arg1: i32) -> (i32, i32) {
    %c0_i32 = arith.constant 0 : i32
    %c0_i32_0 = arith.constant 0 : i32
    %c0_i32_1 = arith.constant 0 : i32
    return %c0_i32, %c0_i32_0 : i32, i32
  }
  func.func @transform_3(%arg0: i32, %arg1: i32) -> (i32, i32, i32) {
    %c0_i32 = arith.constant 0 : i32
    %c0_i32_0 = arith.constant 0 : i32
    return %arg0, %c0_i32, %arg1 : i32, i32, i32
  }
  func.func @transform_4(%arg0: i32, %arg1: i32) -> (i32, i32, i32) {
    %c0_i32 = arith.constant 0 : i32
    %c0_i32_0 = arith.constant 0 : i32
    return %arg0, %c0_i32, %arg1 : i32, i32, i32
  }
  func.func @transform_5(%arg0: i32, %arg1: i32) -> (i32, i32, i32) {
    %c0_i32 = arith.constant 0 : i32
    %c0_i32_0 = arith.constant 0 : i32
    return %arg0, %c0_i32, %arg1 : i32, i32, i32
  }
}

</mosaic_0001>

<bundles_post_ra>
// kernel: tpu_custom_call.1
= control target key start
LH: loop header
LB: loop body
LE: loop exit
PB: predicated region body
PF: predicated region fallthrough
CT: control target
= control target key end

     0   :  { %s1146_s0 = inlined_call_operand.vmem [shape: f32[2,4,256], index: 0, kind: input, shape index: {}]   ;;  %s1147_s1 = inlined_call_operand.vmem [shape: f32[20,4], index: 1, kind: input, shape index: {}]   ;;  %s1148_s2 = inlined_call_operand.vmem [shape: f32[20,1], index: 2, kind: input, shape index: {}]   ;;  %s1149_s3 = inlined_call_operand.hbm [shape: f32[2,8,256], index: 3, kind: output, shape index: {0}]   ;;  %s1150_s4 = inlined_call_operand.hbm [shape: f32[2,8,256], index: 4, kind: output, shape index: {1}]   ;;  %s1151_s5 = inlined_call_operand.hbm [shape: f32[2,4,256], index: 5, kind: output, shape index: {2}]  }
   0x1   :  { %1156 = sst [smem:[#allocation11_spill]] %s1146_s0 }
   0x2   :  { %1157 = sst [smem:[#allocation12_spill]] %s1147_s1 }
   0x3   :  { %1158 = sst [smem:[#allocation13_spill]] %s1148_s2 }
   0x4   :  { %11 = vsyncpa [#allocation3], 0 }
   0x5   :  { %13 = vsyncpa [#allocation3 + $0x1], 0 }
   0x6   :  { %14 = vsyncpa [#allocation5], 0 }
   0x7   :  { %16 = vsyncpa [#allocation5 + $0x1], 0  ;;  %s908_s18 = smov 0   ;;  %s910_s19 = smov 0  }
   0x8   :  { %s912_s20 = smov 0   ;;  %s914_s21 = smov 0  }
   0x9   :  { %s916_s22 = smov 0   ;;  %s918_s23 = smov 0  }
   0xa   :  { %s920_s24 = smov 0   ;;  %s922_s25 = smov 0  }
   0xb LB: > { %s1153_s26 = sadd.s32 4294967295, %s870_s25   ;;  %s1152_s27 = sadd.s32 4294967294, %s870_s25   ;;  %s870_s25 = sphi %s922_s25, %s22_s25   ;;  %s866_s24 = sphi %s920_s24, %s1176_s24   ;;  %s862_s23 = sphi %s918_s23, %s1175_s23   ;;  %s858_s22 = sphi %s916_s22, %s1174_s22   ;;  %s854_s21 = sphi %s914_s21, %s1173_s21   ;;  %s850_s20 = sphi %s912_s20, %s1172_s20   ;;  %s846_s19 = sphi %s910_s19, %s1171_s19   ;;  %s842_s18 = sphi %s908_s18, %s1170_s18  }
   0xc   : > { %s31_s28 = sadd.s32 1, %s862_s23  ;;  %s34_s29 = sadd.s32 1, %s866_s24 }
   0xd   : > { %p32_p0 = scmp.ge.s32.totalorder %s31_s28, 2  ;;  %p123_p1 = scmp.ne.s32.totalorder %s850_s20, %s846_s19 }
   0xe   : > { %p124_p2 = scmp.eq.s32.totalorder %s1153_s26, 3  ;;  %p129_p5 = scmp.ne.s32.totalorder %s846_s19, %s842_s18 }
   0xf   : > { %s1178_s28 = smov (%p32_p0, %s31_s28), 0  ;;  %s1180_s29 = smov (!%p32_p0, %s34_s29), %s866_s24 }
  0x10   : > { %1159 = sst [smem:[#allocation9_spill]] %s1178_s28  ;;  %s109_s30 = ssub.s32 %s862_s23, %s1178_s28 }
  0x11   : > { %p961_p3 = por %p124_p2, %p123_p1  ;;  %p36_p4 = scmp.ge.s32.totalorder %s1180_s29, 2 }
  0x12   : > { %p130_p6 = scmp.eq.s32.totalorder %s1152_s27, 3  ;;  %p592_p7 = scmp.ge.s32.totalorder %s870_s25, 1 }
  0x13   : > { %s1182_s29 = smov (%p36_p4, %s1180_s29), 0  ;;  %p221_p9 = scmp.lt.s32.totalorder %s870_s25, 5 }
  0x14   : > { %1161 = sst [smem:[#allocation10_spill]] %s1182_s29  ;;  %p972_p8 = por %p130_p6, %p129_p5 }
  0x15   : > { %s108_s8 = ssub.s32 %s866_s24, %s1182_s29  ;;  %s113_s9 = sadd.s32 1, %s850_s20 }
  0x16   : > { %s110_s10 = sor.u32 %s109_s30, %s108_s8  ;;  %p222_p10 = pnand %p592_p7, %p221_p9 }
  0x17   : > { %p111_p11 = scmp.eq.s32.totalorder %s110_s10, 0  ;;  %p262_p12 = scmp.lt.s32.totalorder (!%p222_p10), %s858_s22, 1  ;;  %v872_v0 = vmov (!%p222_p10), 0.0   ;;  %vm873_vm0 = vmmov (!%p222_p10), 0   ;;  %v874_v3 = vmov (!%p222_p10), 0   ;;  %vm302_vm1 = vcmask (!%p222_p10), 1043456  }
  0x18   : > { %225 = sbr.rel (%p222_p10) target bundleno = 313 (0x139), region = 32  ;;  %p264_p13 = scmp.lt.s32.totalorder (!%p222_p10), %s854_s21, 1  ;;  %617 = vmatprep.subr.mxu0 (!%p222_p10), %v872_v0  ;;  %628 = vmatprep.subr.mxu1 (!%p222_p10), %v872_v0  ;;  %vm292_vm2 = vcmask (!%p222_p10), 31744  }
  0x19   : > { %s981_s11 = scalar_select %p111_p11, %s850_s20, %s113_s9  }
  0x1a   : > { %s1163_s2 = sld [smem:[#allocation13_spill]] (!%p222_p10)  ;;  %619 = vmatprep.mubr.msk.f32.mxu0 (!%p222_p10), %vm873_vm0, %v872_v0  ;;  %622 = vmatprep.mubr.msk.f32.mxu1 (!%p222_p10), %vm873_vm0, %v872_v0  ;;  %s1164_s0 = sld [smem:[#allocation11_spill]] (!%p222_p10) }
  0x1b   : > { %714 = vset.pattern.permute.xlu0 (!%p222_p10), %v874_v3  ;;  %715 = vset.pattern.permute.xlu1 (!%p222_p10), %v874_v3  ;;  %s1165_s1 = sld [smem:[#allocation12_spill]] (!%p222_p10)  ;;  %s1012_s26 = sand.u32 (!%p222_p10), 1, %s846_s19  }
  0x1c   : > { %s605_s29 = sshll.u32 (!%p222_p10), %s858_s22, 1  ;;  %s1166_s10 = sadd.s32 (!%p222_p10), 4294967295, %s870_s25  }
  0x1d   : > { %s411_s9 = sadd.s32 (!%p222_p10), %s854_s21, %s605_s29 }
  0x1e   : > { %s606_s13 = sshll.u32 (!%p222_p10), %s411_s9, 7  ;;  %s610_s29 = sshll.u32 (!%p222_p10), %s411_s9, 6 }
  0x1f   : > { %s263_s14 = scalar_select %p262_p12, %s858_s22, 1 }
  0x20   : > { %v275_v1 = vld [vmem:[%s1163_s2 + $0x8] sm:$0xff]  ;;  %v276_v2 = vld [vmem:[%s1163_s2 + $0x10] sm:$0xf]  ;;  %s265_s17 = scalar_select %p264_p13, %s854_s21, 1  ;;  %v274_v4 = vld [vmem:[%s1163_s2] sm:$0xff] }
  0x21   : > { %s596_s30 = sshll.u32 %s263_s14, 1  ;;  %284 = vperm.xlu0 %714, %v275_v1   ;;  %289 = vperm.xlu1 %715, %v276_v2   ;;  %v271_v5 = vld [vmem:[%s1165_s1] sm:$0xff]  ;;  %v272_v6 = vld [vmem:[%s1165_s1 + $0x8] sm:$0xff]  ;;  %v273_v8 = vld [vmem:[%s1165_s1 + $0x10] sm:$0xf]  ;;  %s1028_s21 = scalar_lea.hbm %s1150_s4, %s606_s13 }
  0x22   : > { %s267_s8 = sadd.s32 %s596_s30, %s265_s17  ;;  %s595_s30 = sshll.u32 %s1012_s26, 2 }
  0x23   : > { %s597_s12 = sshll.u32 %s267_s8, 2  ;;  %s593_s8 = sshll.u32 %s1012_s26, 3 }
  0x24   : > { %s269_s15 = scalar_lea.vmem %s1164_s0, %s597_s12  ;;  %s1020_s12 = sand.u32 1, %s1166_s10  }
  0x25   : > { %v270_v7 = vld [vmem:[%s269_s15] sm:$0xf]  ;;  %279 = vperm.xlu0 %714, %v274_v4   ;;  %s1022_s15 = scalar_lea.vmem [#allocation6], %s595_s30  ;;  %s254_s14 = scalar_lea.vmem [#allocation4], %s593_s8 }
  0x26   : > { %618 = vmatpush3.msk.msra.mxu0 %vm302_vm1, %v270_v7  ;;  %629 = vmatpush3.msk.msra.mxu1 %vm302_vm1, %v270_v7  ;;  %s445_s16 = sshll.u32 %s1022_s15, 4  ;;  %s430_s27 = sshll.u32 %s254_s14, 4  ;;  %s1030_s27 = int_to_ptr.vmem [resolvable:$true] %s430_s27  ;;  %s1039_s16 = int_to_ptr.vmem [resolvable:$true] %s445_s16 }
  0x27   : > { %620 = vmatmul.mubr.msk.f32.vlgmr.msra.gmra.mrb[0].mxu0 %vm292_vm2, %v271_v5  ;;  %623 = vmatmul.mubr.msk.f32.vlgmr.msra.gmra.mrb[0].mxu1 %vm292_vm2, %v272_v6  ;;  %s247_s17 = scalar_lea.vmem [#allocation2], %s593_s8  ;;  %s1035_s10 = scalar_lea.hbm %s1149_s3, %s606_s13 }
  0x28   : > { %625 = vmatprep.mubr.msk.f32.mxu1 %vm873_vm0, %v872_v0  ;;  %s415_s0 = sshll.u32 %s247_s17, 4  ;;  %s1044_s22 = scalar_lea.hbm %s1151_s5, %s610_s29  ;;  %s1037_s0 = int_to_ptr.vmem [resolvable:$true] %s415_s0 }
  0x29   : > { %s395_s2 = scalar_lea.sflag [#allocation5], %s1020_s12  ;;  %s716_s28 = scalar_lea.vmem %s1030_s27, 128 }
  0x2a   : > { %p717_p0 = scmp.ne.s32.totalorder %s1030_s27, %s716_s28  ;;  %s875_s13 = smov [#allocation4]  }
  0x2b   : > { %626 = vmatmul.mubr.msk.f32.gmra.mrb[2].mxu1 %vm292_vm2, %v273_v8  ;;  %s720_s30 = sshll.u32 %s875_s13, 4  ;;  %s721_s30 = int_to_ptr.vmem [resolvable:$false] %s720_s30 }
  0x2c   : > { %p718_p1 = pnand %p717_p0, %p961_p3  ;;  %s722_s8 = scalar_lea.vmem %s721_s30, 256 }
  0x2d   : > { %p723_p4 = scmp.lt.s32.totalorder %s1030_s27, %s721_s30  ;;  %p724_p5 = scmp.lt.s32.totalorder %s722_s8, %s716_s28 }
  0x2e   : > { %p719_p2 = pneg %p718_p1 }
  0x2f   : > { %p725_p6 = por %p724_p5, %p723_p4 }
  0x31   : > { %p726_p7 = pnand %p725_p6, %p719_p2 }
  0xa0   : > { %v285_v9 = vpop.permute.xlu0 %284  ;;  %v290_v17 = vpop.permute.xlu1 %289 }
  0xa4   : > { %v280_v10 = vpop.permute.xlu0 %279 }
  0xfa   : > { %v372_v11 = vpop.f32.mrb[0].mxu0  ;;  %v377_v12 = vpop.f32.mrb[0].mxu1 }
  0xfb   : > { %v373_v13 = vadd.f32 %v372_v11, %v280_v10  ;;  %v378_v14 = vadd.f32 %v377_v12, %v285_v9  ;;  %v624_v15 = vpop.f32.mrb[1].mxu1  ;;  %v621_v16 = vpop.f32.mrb[1].mxu0 }
  0xfd   : > { %386 = vst [vmem:[%s247_s17] sm:$0xff] %v373_v13  ;;  %387 = vst [vmem:[%s254_s14] sm:$0xff] %v378_v14 }
  0xfe   : > { %v382_v18 = vpop.f32.mrb[2].mxu1 }
  0xff   : > { %729 = shalt.err (!%p726_p7)
}
 0x100   : > { %s730_s14 = scalar_lea.hbm %s1028_s21, 128  ;;  %s734_s1 = scalar_lea.hbm %s1150_s4, 512 }
 0x101   : > { %p731_p9 = scmp.ne.s32.totalorder %s1028_s21, %s730_s14  ;;  %p735_p12 = scmp.lt.u32.totalorder %s1028_s21, %s1150_s4 }
 0x102   : > { %p736_p13 = scmp.lt.u32.totalorder %s734_s1, %s730_s14  ;;  %p738_p1 = scmp.lt.u32.totalorder %s730_s14, %s1028_s21 }
 0x103   : > { %p732_p10 = pnand %p731_p9, %p961_p3 }
 0x104   : > { %p737_p0 = por %p736_p13, %p735_p12 }
 0x105   : > { %p733_p11 = pneg %p732_p10 }
 0x106   : > { %p739_p2 = por %p738_p1, %p737_p0 }
 0x108   : > { %p740_p4 = pnand %p739_p2, %p733_p11 }
 0x10a   : > { %743 = shalt.err (!%p740_p4)
}
 0x10b   : > { %631 = dma.vmem_to_hbm [thread:$0]  (%p961_p3), %s1030_s27, 128, %s1028_s21, %s395_s2   ;;  %v383_v19 = vadd.f32 %v382_v18, %v290_v17  ;;  %v627_v20 = vpop.f32.mrb[3].mxu1 }
 0x10c   : > { %s390_s28 = scalar_lea.sflag [#allocation3], %s1012_s26  ;;  %s744_s30 = scalar_lea.vmem %s1037_s0, 128 }
 0x10d   : > { %p745_p5 = scmp.ne.s32.totalorder %s1037_s0, %s744_s30  ;;  %s876_s8 = smov [#allocation2]  }
 0x10e   : > { %s748_s14 = sshll.u32 %s876_s8, 4  ;;  %s749_s14 = int_to_ptr.vmem [resolvable:$false] %s748_s14 }
 0x10f   : > { %p746_p6 = pnand %p745_p5, %p961_p3  ;;  %s750_s17 = scalar_lea.vmem %s749_s14, 256 }
 0x110   : > { %p751_p9 = scmp.lt.s32.totalorder %s1037_s0, %s749_s14  ;;  %p752_p10 = scmp.lt.s32.totalorder %s750_s17, %s744_s30 }
 0x111   : > { %p747_p7 = pneg %p746_p6 }
 0x112   : > { %p753_p11 = por %p752_p10, %p751_p9 }
 0x114   : > { %p754_p12 = pnand %p753_p11, %p747_p7 }
 0x116   : > { %757 = shalt.err (!%p754_p12)
}
 0x117   : > { %s758_s26 = scalar_lea.hbm %s1035_s10, 128  ;;  %s762_s29 = scalar_lea.hbm %s1149_s3, 512 }
 0x118   : > { %p759_p13 = scmp.ne.s32.totalorder %s1035_s10, %s758_s26  ;;  %p763_p2 = scmp.lt.u32.totalorder %s1035_s10, %s1149_s3 }
 0x119   : > { %p764_p4 = scmp.lt.u32.totalorder %s762_s29, %s758_s26  ;;  %p766_p6 = scmp.lt.u32.totalorder %s758_s26, %s1035_s10 }
 0x11a   : > { %p760_p0 = pnand %p759_p13, %p961_p3 }
 0x11b   : > { %p765_p5 = por %p764_p4, %p763_p2 }
 0x11c   : > { %p761_p1 = pneg %p760_p0 }
 0x11d   : > { %p767_p7 = por %p766_p6, %p765_p5 }
 0x11f   : > { %p768_p9 = pnand %p767_p7, %p761_p1 }
 0x121   : > { %771 = shalt.err (!%p768_p9)
}
 0x122   : > { %630 = dma.vmem_to_hbm [thread:$0]  (%p961_p3), %s1037_s0, 128, %s1035_s10, %s390_s28   ;;  %388 = vst [vmem:[%s1022_s15] sm:$0xf] %v383_v19 }
 0x123   : > { %s772_s13 = scalar_lea.vmem %s1039_s16, 64  ;;  %s877_s30 = smov [#allocation6]  }
 0x124   : > { %p773_p10 = scmp.ne.s32.totalorder %s1039_s16, %s772_s13  ;;  %s776_s8 = sshll.u32 %s877_s30, 4  ;;  %s777_s8 = int_to_ptr.vmem [resolvable:$false] %s776_s8 }
 0x125   : > { %s778_s14 = scalar_lea.vmem %s777_s8, 128  ;;  %p779_p13 = scmp.lt.s32.totalorder %s1039_s16, %s777_s8 }
 0x126   : > { %p774_p11 = pnand %p773_p10, %p961_p3  ;;  %p780_p0 = scmp.lt.s32.totalorder %s778_s14, %s772_s13 }
 0x128   : > { %p775_p12 = pneg %p774_p11  ;;  %p781_p1 = por %p780_p0, %p779_p13 }
 0x12a   : > { %p782_p2 = pnand %p781_p1, %p775_p12 }
 0x12c   : > { %785 = shalt.err (!%p782_p2)
}
 0x12d   : > { %s786_s0 = scalar_lea.hbm %s1044_s22, 64  ;;  %s790_s28 = scalar_lea.hbm %s1151_s5, 256 }
 0x12e   : > { %p787_p4 = scmp.ne.s32.totalorder %s1044_s22, %s786_s0  ;;  %p791_p7 = scmp.lt.u32.totalorder %s1044_s22, %s1151_s5 }
 0x12f   : > { %p792_p9 = scmp.lt.u32.totalorder %s790_s28, %s786_s0  ;;  %p794_p11 = scmp.lt.u32.totalorder %s786_s0, %s1044_s22 }
 0x130   : > { %p788_p5 = pnand %p787_p4, %p961_p3 }
 0x131   : > { %p793_p10 = por %p792_p9, %p791_p7 }
 0x132   : > { %p789_p6 = pneg %p788_p5 }
 0x133   : > { %p795_p12 = por %p794_p11, %p793_p10 }
 0x135   : > { %p796_p13 = pnand %p795_p12, %p789_p6 }
 0x137   : > { %799 = shalt.err (!%p796_p13)
}
 0x138   : > { %632 = dma.vmem_to_hbm [thread:$0]  (%p961_p3), %s1039_s16, 64, %s1044_s22, %s395_s2  }
 0x139 PF: > { %p646_p0 = scmp.ge.s32.totalorder %s870_s25, 2  ;;  %s457_s27 = sand.u32 1, %s842_s18  }
 0x13a   : > { %s458_s21 = scalar_lea.sflag [#allocation3], %s457_s27 }
 0x13b   : > { %p637_p1 = pnand %p646_p0, %p972_p8 }
 0x13d   : > { %833 = dma.done.wait (!%p637_p1), %s458_s21, 128  }
 0x13e   : > { %835 = vsyncadd (!%p637_p1), %s458_s21, 4294967168  ;;  %s1167_s29 = sadd.s32 4294967294, %s870_s25  }
 0x13f   : > { %s466_s1 = sand.u32 1, %s1167_s29  }
 0x140   : > { %s467_s6 = scalar_lea.sflag [#allocation5], %s466_s1 }
 0x141   : > { %837 = dma.done.wait (!%p637_p1), %s467_s6, 192  }
 0x142   : > { %839 = vsyncadd (!%p637_p1), %s467_s6, 4294967104  ;;  %s22_s25 = sadd.s32 1, %s870_s25   ;;  %s1168_s2 = sld [smem:[#allocation9_spill]] }
 0x143   : > { %p19_p3 = scmp.ge.s32.totalorder %s22_s25, 6   ;;  %s1169_s7 = sld [smem:[#allocation10_spill]] }
 0x144   : > { %s1170_s18 = smov %s846_s19  ;;  %s1171_s19 = smov %s850_s20 }
 0x145   : > { %s1172_s20 = smov %s981_s11  ;;  %s1173_s21 = smov %s862_s23 }
 0x146   : > { %s1174_s22 = smov %s866_s24  ;;  %21 = sbr.rel (!%p19_p3) target bundleno = 11 (0xb), region = 99 }
 0x148   : > { %s1175_s23 = smov %s1168_s2 }
 0x149   : > { %s1176_s24 = smov %s1169_s7 }
 0x14d   :  { %481 = vsyncpa [#allocation3], 1 }
 0x14e   :  { %483 = vsyncpa [#allocation3 + $0x1], 1 }
 0x14f   :  { %484 = vsyncpa [#allocation5], 1 }
 0x150   :  { %486 = vsyncpa [#allocation5 + $0x1], 1 }

</bundles_post_ra>
